<compile_context>
chip_gen: v6e
topology: v6e:2x2x1
jax: 0.10.0
libtpu: 0.0.40
codegen_flags: <defaults>
</compile_context>

<pallas_src>
import functools

import jax
import jax.numpy as jnp
from jax.experimental import pallas as pl
from jax.experimental.pallas import tpu as pltpu

LANE = 128  # TPU vreg lane width


def mlp_kernel(x_ref, w1_ref, b1_ref, w2_ref, b2_ref, w3_ref, b3_ref, o_ref,
               *, precision):
    # Feature-major: batch lives on the lane axis.  One batch tile per grid
    # step; all weights/biases stay VMEM-resident (constant index maps).
    x = x_ref[...]                                                    # (19, TB)
    h1 = jnp.dot(w1_ref[...], x, preferred_element_type=jnp.float32,
                 precision=precision) + b1_ref[...]                   # (16, TB)
    h1 = jnp.maximum(h1, 0.0)
    h2 = jnp.dot(w2_ref[...], h1.astype(w2_ref.dtype),
                 preferred_element_type=jnp.float32,
                 precision=precision) + b2_ref[...]                   # (8, TB)
    h2 = jnp.maximum(h2, 0.0)
    o = jnp.dot(w3_ref[...], h2.astype(w3_ref.dtype),
                preferred_element_type=jnp.float32,
                precision=precision) + b3_ref[...]                    # (3, TB)
    o_ref[...] = o.astype(o_ref.dtype)


def _choose_tb(B, block_batch):
    """Batch-lane tile size.

    Small batches -> one full-extent block (always layout-legal).  Large
    batches -> a multiple of 128 lanes, capped by block_batch (VMEM budget)
    and by ~B/4 so the grid keeps >= 4 steps for v7x megacore sharding.
    """
    if B <= 4 * LANE:
        return B
    quarter = ((B // 4) // LANE) * LANE
    return max(LANE, min(block_batch, quarter))


@functools.partial(jax.jit, static_argnames=("block_batch", "input_dtype"))
def diabetes_model_forward_t(x_t, params, *, block_batch=16384, input_dtype=None):
    """Feature-major forward: x_t is (19, B); returns (3, B) float32.

    Feed data already transposed (fold the transpose into the producer) to
    avoid an extra HBM pass over x.
    """
    F, B = x_t.shape
    w1, b1 = params["w1"], params["b1"]
    w2, b2 = params["w2"], params["b2"]
    w3, b3 = params["w3"], params["b3"]

    if input_dtype is not None:
        cdt = jnp.dtype(input_dtype)
        x_t = x_t.astype(cdt)
        w1, w2, w3 = w1.astype(cdt), w2.astype(cdt), w3.astype(cdt)
        precision = jax.lax.Precision.DEFAULT      # bf16-native MXU path
    else:
        precision = jax.lax.Precision.HIGHEST      # true fp32 (PyTorch parity)

    TB = _choose_tb(B, block_batch)
    num_steps = (B + TB - 1) // TB      # ragged last block -> masked boundary IO

    const = lambda a: pl.BlockSpec(a.shape, lambda i: (0,) * a.ndim)

    param_bytes = sum(int(a.size) * a.dtype.itemsize
                      for a in (w1, b1, w2, b2, w3, b3))
    cost = pl.CostEstimate(
        flops=2 * B * (19 * 16 + 16 * 8 + 8 * 3),
        bytes_accessed=B * F * x_t.dtype.itemsize + B * 3 * 4 + param_bytes,
        transcendentals=0,
    )

    return pl.pallas_call(
        functools.partial(mlp_kernel, precision=precision),
        out_shape=jax.ShapeDtypeStruct((3, B), jnp.float32),
        grid=(num_steps,),
        in_specs=[
            pl.BlockSpec((F, TB), lambda i: (0, i)),   # x: streamed over batch lanes
            const(w1), const(b1),
            const(w2), const(b2),
            const(w3), const(b3),
        ],
        out_specs=pl.BlockSpec((3, TB), lambda i: (0, i)),
        compiler_params=pltpu.CompilerParams(
            dimension_semantics=("parallel",),   # megacore sharding on v7x
            vmem_limit_bytes=32 << 20,           # headroom; tiles use ~7 MiB max
        ),
        cost_estimate=cost,
    )(x_t, w1, b1, w2, b2, w3, b3)


def diabetes_model_forward(x, params, *, block_batch=16384, input_dtype=None):
    """PyTorch-layout convenience wrapper: x is (B, 19); returns (B, 3).

    NOTE: the transposes here cost one extra HBM pass over x / out; prefer
    diabetes_model_forward_t with feature-major data in production.
    """
    out_t = diabetes_model_forward_t(x.T, params, block_batch=block_batch,
                                     input_dtype=input_dtype)
    return out_t.T


def init_params(key):
    """Deterministic init mimicking PyTorch nn.Linear defaults
    (U[-1/sqrt(fan_in), +1/sqrt(fan_in)]).  Weights stay in the PyTorch
    (out_features, in_features) orientation; biases are (out_features, 1)."""
    dims = [(19, 16), (16, 8), (8, 3)]
    params = {}
    for i, (fan_in, fan_out) in enumerate(dims, start=1):
        key, kw, kb = jax.random.split(key, 3)
        bound = 1.0 / jnp.sqrt(jnp.float32(fan_in))
        params[f"w{i}"] = jax.random.uniform(
            kw, (fan_out, fan_in), jnp.float32, minval=-bound, maxval=bound)
        params[f"b{i}"] = jax.random.uniform(
            kb, (fan_out, 1), jnp.float32, minval=-bound, maxval=bound)
    return params


def reference_forward(x, params, precision):
    """Pure-JAX reference on (B, 19) inputs (PyTorch layout)."""
    h = jnp.maximum(
        jnp.dot(x, params["w1"].T, precision=precision) + params["b1"].T, 0.0)
    h = jnp.maximum(
        jnp.dot(h, params["w2"].T, precision=precision) + params["b2"].T, 0.0)
    return jnp.dot(h, params["w3"].T, precision=precision) + params["b3"].T


if __name__ == "__main__":
    key = jax.random.PRNGKey(0)
    key, kx1, kx2, kx3 = jax.random.split(key, 4)
    params = init_params(key)
    HI = jax.lax.Precision.HIGHEST

    # Case 1: tiny batch through the PyTorch-layout wrapper (single full block).
    x1 = jax.random.normal(kx1, (8, 19), dtype=jnp.float32)
    out1 = jax.block_until_ready(diabetes_model_forward(x1, params))
    ref1 = reference_forward(x1, params, HI)
    assert out1.shape == (8, 3), out1.shape
    assert jnp.allclose(out1, ref1, atol=1e-5, rtol=1e-5), "mismatch (B=8)"

    # Case 2: feature-major input, multi-step grid with a ragged last block
    # (B=397, TB=128 -> 4 grid steps; no jnp.pad / slice copies anywhere).
    x2_t = jax.random.normal(kx2, (19, 397), dtype=jnp.float32)
    out2_t = jax.block_until_ready(
        diabetes_model_forward_t(x2_t, params, block_batch=128))
    ref2 = reference_forward(x2_t.T, params, HI)
    assert out2_t.shape == (3, 397), out2_t.shape
    assert jnp.allclose(out2_t.T, ref2, atol=1e-5, rtol=1e-5), "mismatch (B=397)"

    # Case 3: bf16 input/weight cast (halves streamed HBM bytes); f32 accumulate.
    x3 = jax.random.normal(kx3, (13, 19), dtype=jnp.float32)
    out3 = jax.block_until_ready(
        diabetes_model_forward(x3, params, input_dtype=jnp.bfloat16))
    ref3 = reference_forward(x3, params, jax.lax.Precision.DEFAULT)
    assert out3.shape == (13, 3), out3.shape
    assert jnp.allclose(out3, ref3, atol=3e-2, rtol=3e-2), "mismatch (bf16)"

    print("KERNEL_OK")
</pallas_src>

<mosaic_0001>
module attributes {stable_mosaic.version = 11 : i64} {
  func.func @mlp_kernel(%arg0: i32, %arg1: memref<19x8xf32, #tpu.memory_space<vmem>>, %arg2: memref<16x19xf32, #tpu.memory_space<vmem>>, %arg3: memref<16x1xf32, #tpu.memory_space<vmem>>, %arg4: memref<8x16xf32, #tpu.memory_space<vmem>>, %arg5: memref<8x1xf32, #tpu.memory_space<vmem>>, %arg6: memref<3x8xf32, #tpu.memory_space<vmem>>, %arg7: memref<3x1xf32, #tpu.memory_space<vmem>>, %arg8: memref<3x8xf32, #tpu.memory_space<vmem>>) attributes {dimension_semantics = [#tpu.dimension_semantics<parallel>], iteration_bounds = array<i64: 1>, scalar_prefetch = 0 : i64, scratch_operands = 0 : i64, tpu.core_type = #tpu.core_type<tc>, window_params = [{transform_indices = @transform_0, window_bounds = array<i64: 19, 8>}, {pipeline_mode = #tpu.pipeline_mode<synchronous>, transform_indices = @transform_1, window_bounds = array<i64: 16, 19>}, {pipeline_mode = #tpu.pipeline_mode<synchronous>, transform_indices = @transform_2, window_bounds = array<i64: 16, 1>}, {pipeline_mode = #tpu.pipeline_mode<synchronous>, transform_indices = @transform_3, window_bounds = array<i64: 8, 16>}, {pipeline_mode = #tpu.pipeline_mode<synchronous>, transform_indices = @transform_4, window_bounds = array<i64: 8, 1>}, {pipeline_mode = #tpu.pipeline_mode<synchronous>, transform_indices = @transform_5, window_bounds = array<i64: 3, 8>}, {pipeline_mode = #tpu.pipeline_mode<synchronous>, transform_indices = @transform_6, window_bounds = array<i64: 3, 1>}, {transform_indices = @transform_7, window_bounds = array<i64: 3, 8>}]} {
    %c0 = arith.constant 0 : index
    %c0_0 = arith.constant 0 : index
    %0 = vector.load %arg1[%c0, %c0_0] : memref<19x8xf32, #tpu.memory_space<vmem>>, vector<19x8xf32>
    %c0_1 = arith.constant 0 : index
    %c0_2 = arith.constant 0 : index
    %1 = vector.load %arg2[%c0_1, %c0_2] : memref<16x19xf32, #tpu.memory_space<vmem>>, vector<16x19xf32>
    %cst = arith.constant dense<0.000000e+00> : vector<16x8xf32>
    %2 = tpu.matmul %1, %0, %cst {dimension_numbers = #tpu.dot_dimension_numbers<[1], [0], [0], [1], [0, 0, 1, 1], [], []>, precision = #tpu.contract_precision<fp32>} : vector<16x19xf32>, vector<19x8xf32>, vector<16x8xf32> -> vector<16x8xf32>
    %c0_3 = arith.constant 0 : index
    %c0_4 = arith.constant 0 : index
    %3 = vector.load %arg3[%c0_3, %c0_4] : memref<16x1xf32, #tpu.memory_space<vmem>>, vector<16x1xf32>
    %4 = vector.broadcast %3 : vector<16x1xf32> to vector<16x8xf32>
    %5 = arith.addf %2, %4 : vector<16x8xf32>
    %cst_5 = arith.constant 0.000000e+00 : f32
    %6 = vector.broadcast %cst_5 : f32 to vector<16x8xf32>
    %7 = arith.maximumf %5, %6 : vector<16x8xf32>
    %c0_6 = arith.constant 0 : index
    %c0_7 = arith.constant 0 : index
    %8 = vector.load %arg4[%c0_6, %c0_7] : memref<8x16xf32, #tpu.memory_space<vmem>>, vector<8x16xf32>
    %cst_8 = arith.constant dense<0.000000e+00> : vector<8x8xf32>
    %9 = tpu.matmul %8, %7, %cst_8 {dimension_numbers = #tpu.dot_dimension_numbers<[1], [0], [0], [1], [0, 0, 1, 1], [], []>, precision = #tpu.contract_precision<fp32>} : vector<8x16xf32>, vector<16x8xf32>, vector<8x8xf32> -> vector<8x8xf32>
    %c0_9 = arith.constant 0 : index
    %c0_10 = arith.constant 0 : index
    %10 = vector.load %arg5[%c0_9, %c0_10] : memref<8x1xf32, #tpu.memory_space<vmem>>, vector<8x1xf32>
    %11 = vector.broadcast %10 : vector<8x1xf32> to vector<8x8xf32>
    %12 = arith.addf %9, %11 : vector<8x8xf32>
    %cst_11 = arith.constant 0.000000e+00 : f32
    %13 = vector.broadcast %cst_11 : f32 to vector<8x8xf32>
    %14 = arith.maximumf %12, %13 : vector<8x8xf32>
    %c0_12 = arith.constant 0 : index
    %c0_13 = arith.constant 0 : index
    %15 = vector.load %arg6[%c0_12, %c0_13] : memref<3x8xf32, #tpu.memory_space<vmem>>, vector<3x8xf32>
    %cst_14 = arith.constant dense<0.000000e+00> : vector<3x8xf32>
    %16 = tpu.matmul %15, %14, %cst_14 {dimension_numbers = #tpu.dot_dimension_numbers<[1], [0], [0], [1], [0, 0, 1, 1], [], []>, precision = #tpu.contract_precision<fp32>} : vector<3x8xf32>, vector<8x8xf32>, vector<3x8xf32> -> vector<3x8xf32>
    %c0_15 = arith.constant 0 : index
    %c0_16 = arith.constant 0 : index
    %17 = vector.load %arg7[%c0_15, %c0_16] : memref<3x1xf32, #tpu.memory_space<vmem>>, vector<3x1xf32>
    %18 = vector.broadcast %17 : vector<3x1xf32> to vector<3x8xf32>
    %19 = arith.addf %16, %18 : vector<3x8xf32>
    %c0_17 = arith.constant 0 : index
    %c0_18 = arith.constant 0 : index
    %20 = vector.load %arg8[%c0_17, %c0_18] : memref<3x8xf32, #tpu.memory_space<vmem>>, vector<3x8xf32>
    tpu.vector_store %arg8[%c0_17, %c0_18], %19 {strides = array<i32>} : memref<3x8xf32, #tpu.memory_space<vmem>>, vector<3x8xf32>,
    return
  }
  func.func @transform_0(%arg0: i32) -> (i32, i32) {
    %c0_i32 = arith.constant 0 : i32
    %c0_i32_0 = arith.constant 0 : i32
    return %c0_i32, %arg0 : i32, i32
  }
  func.func @transform_1(%arg0: i32) -> (i32, i32) {
    %c0_i32 = arith.constant 0 : i32
    %c0_i32_0 = arith.constant 0 : i32
    %c0_i32_1 = arith.constant 0 : i32
    return %c0_i32, %c0_i32_0 : i32, i32
  }
  func.func @transform_2(%arg0: i32) -> (i32, i32) {
    %c0_i32 = arith.constant 0 : i32
    %c0_i32_0 = arith.constant 0 : i32
    %c0_i32_1 = arith.constant 0 : i32
    return %c0_i32, %c0_i32_0 : i32, i32
  }
  func.func @transform_3(%arg0: i32) -> (i32, i32) {
    %c0_i32 = arith.constant 0 : i32
    %c0_i32_0 = arith.constant 0 : i32
    %c0_i32_1 = arith.constant 0 : i32
    return %c0_i32, %c0_i32_0 : i32, i32
  }
  func.func @transform_4(%arg0: i32) -> (i32, i32) {
    %c0_i32 = arith.constant 0 : i32
    %c0_i32_0 = arith.constant 0 : i32
    %c0_i32_1 = arith.constant 0 : i32
    return %c0_i32, %c0_i32_0 : i32, i32
  }
  func.func @transform_5(%arg0: i32) -> (i32, i32) {
    %c0_i32 = arith.constant 0 : i32
    %c0_i32_0 = arith.constant 0 : i32
    %c0_i32_1 = arith.constant 0 : i32
    return %c0_i32, %c0_i32_0 : i32, i32
  }
  func.func @transform_6(%arg0: i32) -> (i32, i32) {
    %c0_i32 = arith.constant 0 : i32
    %c0_i32_0 = arith.constant 0 : i32
    %c0_i32_1 = arith.constant 0 : i32
    return %c0_i32, %c0_i32_0 : i32, i32
  }
  func.func @transform_7(%arg0: i32) -> (i32, i32) {
    %c0_i32 = arith.constant 0 : i32
    %c0_i32_0 = arith.constant 0 : i32
    return %c0_i32, %arg0 : i32, i32
  }
}

</mosaic_0001>

<bundles_post_ra>
// kernel: diabetes_model_forward_t.1
= control target key start
LH: loop header
LB: loop body
LE: loop exit
PB: predicated region body
PF: predicated region fallthrough
CT: control target
= control target key end

     0   :  { %vm51_vm0 = vcmask 1042432   ;;  %vm44_vm1 = vcmask 154624   ;;  %v1730_v11 = vmov 0   ;;  %s1897_s0 = inlined_call_operand.vmem [shape: f32[19,8], index: 0, kind: input, shape index: {}]   ;;  %s1898_s1 = inlined_call_operand.vmem [shape: f32[16,19], index: 1, kind: input, shape index: {}]   ;;  %s1899_s2 = inlined_call_operand.vmem [shape: f32[16,1], index: 2, kind: input, shape index: {}]   ;;  %s1900_s3 = inlined_call_operand.vmem [shape: f32[8,16], index: 3, kind: input, shape index: {}]   ;;  %s1901_s4 = inlined_call_operand.vmem [shape: f32[8,1], index: 4, kind: input, shape index: {}]   ;;  %s1902_s5 = inlined_call_operand.vmem [shape: f32[3,8], index: 5, kind: input, shape index: {}]   ;;  %s1903_s6 = inlined_call_operand.vmem [shape: f32[3,1], index: 6, kind: input, shape index: {}]   ;;  %s1904_s7 = inlined_call_operand.hbm [shape: f32[3,8], index: 7, kind: output, shape index: {}]  }
   0x1   :  { %v29_v0 = vld [vmem:[%s1897_s0 + $0x10] sm:$0x7]  ;;  %v28_v1 = vld [vmem:[%s1897_s0 + $0x8] sm:$0xff]  ;;  %v27_v2 = vld [vmem:[%s1897_s0] sm:$0xff]  ;;  %1706 = vset.pattern.permute.xlu0 %v1730_v11  ;;  %1707 = vset.pattern.permute.xlu1 %v1730_v11 }
   0x2   :  { %v53_v3 = vsel %vm51_vm0, %v29_v0, 0  ;;  %v1783_v4 = vand.u32 4294901760, %v28_v1  ;;  %v1785_v5 = vand.u32 4294901760, %v27_v2  ;;  %v30_v6 = vld [vmem:[%s1898_s1] sm:$0xff]  ;;  %v31_v7 = vld [vmem:[%s1898_s1 + $0x8] sm:$0xff] }
   0x3   :  { %v1793_v8 = vand.u32 4294901760, %v53_v3  ;;  %v46_v9 = vsel %vm44_vm1, %v30_v6, 0  ;;  %v49_v10 = vsel %vm44_vm1, %v31_v7, 0  ;;  %v33_v12 = vld [vmem:[%s1899_s2 + $0x8] sm:$0xff] }
   0x4   :  { %v1798_v13 = vand.u32 4294901760, %v46_v9  ;;  %v1800_v14 = vand.u32 4294901760, %v49_v10  ;;  %v178_v15 = vsub.f32 %v28_v1, %v1783_v4  ;;  %v185_v16 = vsub.f32 %v27_v2, %v1785_v5  ;;  %41 = vperm.xlu0 %1706, %v33_v12  }
   0x5   :  { %12 = vsyncpa [#allocation3], 0  ;;  %1576 = vmatprep.subr.mxu0 %v1793_v8  ;;  %v171_v17 = vsub.f32 %v53_v3, %v1793_v8  ;;  %v32_v18 = vld [vmem:[%s1899_s2] sm:$0xff]  ;;  %v1731_v36 = vmov 0.0   ;;  %vm1732_vm2 = vmmov 0   ;;  %vm579_vm3 = vcmask 130048  }
   0x6   :  { %1577 = vmatpush3.msra.mxu0 %v1793_v8  ;;  %v124_v19 = vsub.f32 %v46_v9, %v1798_v13  ;;  %v179_v20 = vand.u32 4294901760, %v178_v15  ;;  %v134_v21 = vsub.f32 %v49_v10, %v1800_v14  ;;  %v186_v22 = vand.u32 4294901760, %v185_v16  ;;  %1591 = vmatprep.mubr.f32.mxu1 %v1798_v13  ;;  %v573_v37 = vld [vmem:[%s1901_s4] sm:$0xff] }
   0x7   :  { %1578 = vmatprep.subr.mxu0 %v1783_v4  ;;  %v172_v23 = vand.u32 4294901760, %v171_v17  ;;  %576 = vperm.xlu1 %1707, %v573_v37   ;;  %v1044_v38 = vld [vmem:[%s1903_s6] sm:$0x7]  ;;  %vm1050_vm4 = vcmask 64512   ;;  %vm1500_vm5 = vcmask 59392  }
   0x8   :  { %1579 = vmatpush3.msra.mxu0 %v1783_v4  ;;  %v125_v24 = vand.u32 4294901760, %v124_v19  ;;  %v180_v25 = vsub.f32 %v178_v15, %v179_v20  ;;  %v135_v26 = vand.u32 4294901760, %v134_v21  ;;  %36 = vperm.xlu0 %1706, %v32_v18   ;;  %v187_v28 = vsub.f32 %v185_v16, %v186_v22  ;;  %v572_v44 = vld [vmem:[%s1900_s3] sm:$0xff] }
   0x9   :  { %1580 = vmatprep.subr.mxu0 %v1785_v5  ;;  %v173_v27 = vsub.f32 %v171_v17, %v172_v23  ;;  %v581_v48 = vsel %vm579_vm3, %v572_v44, 0 }
   0xa   :  { %1581 = vmatpush3.msra.mxu0 %v1785_v5  ;;  %v126_v29 = vsub.f32 %v124_v19, %v125_v24  ;;  %v136_v30 = vsub.f32 %v134_v21, %v135_v26  ;;  %v181_v32 = vand.u32 4294901760, %v180_v25  ;;  %v188_v35 = vand.u32 4294901760, %v187_v28 }
   0xb   :  { %v174_v31 = vand.u32 4294901760, %v173_v27  ;;  %1594 = vmatprep.subr.mxu0 %v171_v17  ;;  %1047 = vperm.xlu1 %1707, %v1044_v38   ;;  %v1849_v51 = vand.u32 4294901760, %v581_v48 }
   0xc   :  { %v127_v33 = vand.u32 4294901760, %v126_v29  ;;  %v137_v34 = vand.u32 4294901760, %v136_v30 }
   0xd   :  { %1585 = vmatprep.subr.mxu1 %v174_v31  ;;  %v651_v56 = vsub.f32 %v581_v48, %v1849_v51 }
   0xe   :  { %1586 = vmatpush3.msra.mxu1 %v174_v31  ;;  %1582 = vmatprep.mubr.f32.mxu0 %v127_v33 }
   0xf   :  { %1587 = vmatprep.subr.mxu1 %v181_v32  ;;  %1583 = vmatmul.mubr.f32.vlgmr.msra.gmra.mxu0 %v137_v34  ;;  %v652_v63 = vand.u32 4294901760, %v651_v56 }
  0x10   :  { %1588 = vmatpush3.msra.mxu1 %v181_v32  ;;  %1595 = vmatpush3.msra.mxu0 %v171_v17 }
  0x11   :  { %1589 = vmatprep.subr.mxu1 %v188_v35  ;;  %1596 = vmatprep.subr.mxu0 %v178_v15 }
  0x12   :  { %1590 = vmatpush3.msra.mxu1 %v188_v35  ;;  %1597 = vmatpush3.msra.mxu0 %v178_v15 }
  0x13   :  { %1592 = vmatmul.mubr.f32.vlgmr.msra.gmra.mxu1 %v1800_v14  ;;  %1598 = vmatprep.subr.mxu0 %v185_v16 }
  0x14   :  { %1603 = vmatprep.subr.mxu1 %v1793_v8  ;;  %1599 = vmatpush3.msra.mxu0 %v185_v16 }
  0x15   :  { %1600 = vmatprep.mubr.f32.mxu0 %v124_v19  ;;  %1604 = vmatpush3.msra.mxu1 %v1793_v8 }
  0x16   :  { %1601 = vmatmul.mubr.f32.vlgmr.msra.gmra.mxu0 %v134_v21  ;;  %1605 = vmatprep.subr.mxu1 %v1783_v4 }
  0x17   :  { %1612 = vmatprep.subr.mxu0 %v172_v23  ;;  %1606 = vmatpush3.msra.mxu1 %v1783_v4 }
  0x18   :  { %1613 = vmatpush3.msra.mxu0 %v172_v23  ;;  %1607 = vmatprep.subr.mxu1 %v1785_v5 }
  0x19   :  { %1614 = vmatprep.subr.mxu0 %v179_v20  ;;  %1608 = vmatpush3.msra.mxu1 %v1785_v5 }
  0x1a   :  { %1609 = vmatprep.mubr.f32.mxu1 %v125_v24  ;;  %1615 = vmatpush3.msra.mxu0 %v179_v20  ;;  %v1043_v20 = vld [vmem:[%s1902_s5] sm:$0x7]  ;;  %s1733_s5 = smov [#allocation2]  }
  0x1b   :  { %1610 = vmatmul.mubr.f32.vlgmr.msra.gmra.mxu1 %v135_v26  ;;  %1616 = vmatprep.subr.mxu0 %v186_v22  ;;  %s1508_s6 = sshll.u32 %s1733_s5, 4  ;;  %s1509_s6 = int_to_ptr.vmem [resolvable:$true] %s1508_s6 }
  0x1c   :  { %1621 = vmatprep.subr.mxu1 %v1793_v8  ;;  %1617 = vmatpush3.msra.mxu0 %v186_v22  ;;  %v1052_v22 = vsel %vm1050_vm4, %v1043_v20, 0  ;;  %s1708_s18 = scalar_lea.vmem %s1509_s6, 64  ;;  %p1713_p1 = scmp.lt.s32.totalorder %s1509_s6, %s1509_s6 }
  0x1d   :  { %1618 = vmatprep.mubr.f32.mxu0 %v1798_v13  ;;  %1622 = vmatpush3.msra.mxu1 %v1793_v8  ;;  %v1120_v26 = vand.u32 4294901760, %v1052_v22  ;;  %p1709_p0 = scmp.ne.s32.totalorder %s1509_s6, %s1708_s18  ;;  %p1714_p2 = scmp.lt.s32.totalorder %s1708_s18, %s1708_s18 }
  0x1e   :  { %1619 = vmatmul.mubr.f32.vlgmr.msra.gmra.mxu0 %v1800_v14  ;;  %1623 = vmatprep.subr.mxu1 %v1783_v4 }
  0x1f   :  { %1624 = vmatpush3.msra.mxu1 %v1783_v4  ;;  %1627 = vmatprep.mubr.f32.mxu1 %v1798_v13  ;;  %v1121_v30 = vsub.f32 %v1052_v22, %v1120_v26  ;;  %p1715_p3 = por %p1714_p2, %p1713_p1 }
  0x20   :  { %1625 = vmatprep.subr.mxu1 %v1785_v5  ;;  %1630 = vmatprep.subr.mxu0 %v1731_v36 }
  0x21   :  { %1626 = vmatpush3.msra.mxu1 %v1785_v5  ;;  %1634 = vmatprep.mubr.msk.f32.mxu0 %vm1732_vm2, %v1731_v36  ;;  %v653_v5 = vsub.f32 %v651_v56, %v652_v63  ;;  %v1122_v37 = vand.u32 4294901760, %v1121_v30  ;;  %p1716_p4 = pnand %p1715_p3, %p1709_p0 }
  0x22   :  { %1628 = vmatmul.mubr.f32.vlgmr.msra.gmra.mxu1 %v1800_v14  ;;  %1637 = vmatprep.subr.mxu1 %v1731_v36 }
  0x23   :  { %1641 = vmatprep.mubr.msk.f32.mxu1 %vm1732_vm2, %v1731_v36  ;;  %v654_v10 = vand.u32 4294901760, %v653_v5 }
  0x7f   :  { %v42_v39 = vpop.permute.xlu0 %41 }
  0x82   :  { %v577_v24 = vpop.permute.xlu1 %576 }
  0x83   :  { %v37_v42 = vpop.permute.xlu0 %36 }
  0xcf   :  { %v1584_v40 = vpop.f32.mrf.mxu0 }
  0xd0   :  { %v140_v41 = vadd.f32 %v1584_v40, %v42_v39 }
  0xd1   :  { %v129_v43 = vpop.f32.mrf.mxu0 }
  0xd2   :  { %v130_v46 = vadd.f32 %v129_v43, %v37_v42  ;;  %v1123_v43 = vsub.f32 %v1121_v30, %v1122_v37 }
  0xd3   :  { %v1593_v45 = vpop.f32.mrf.mxu1 }
  0xd4   :  { %v232_v47 = vadd.f32 %v1593_v45, %v140_v41 }
  0xd5   :  { %v225_v49 = vpop.f32.mrf.mxu1 }
  0xd6   :  { %v1602_v50 = vpop.f32.mrf.mxu0  ;;  %v226_v52 = vadd.f32 %v225_v49, %v130_v46 }
  0xd7   :  { %v317_v53 = vadd.f32 %v1602_v50, %v232_v47  ;;  %v1124_v47 = vand.u32 4294901760, %v1123_v43 }
  0xd8   :  { %v309_v54 = vpop.f32.mrf.mxu0 }
  0xd9   :  { %v310_v57 = vadd.f32 %v309_v54, %v226_v52 }
  0xdb   :  { %v1611_v55 = vpop.f32.mrf.mxu1 }
  0xdc   :  { %v401_v58 = vadd.f32 %v1611_v55, %v317_v53 }
  0xdd   :  { %v392_v59 = vpop.f32.mrf.mxu1 }
  0xde   :  { %v1620_v60 = vpop.f32.mrf.mxu0  ;;  %v393_v61 = vadd.f32 %v392_v59, %v310_v57 }
  0xdf   :  { %v487_v0 = vadd.f32 %v1620_v60, %v401_v58 }
  0xe0   :  { %v480_v62 = vpop.f32.mrf.mxu0 }
  0xe1   :  { %v481_v2 = vadd.f32 %v480_v62, %v393_v61 }
  0xe2   :  { %v1629_v1 = vpop.f32.mrf.mxu1 }
  0xe3   :  { %v567_v3 = vadd.f32 %v1629_v1, %v487_v0 }
  0xe4   :  { %v560_v4 = vpop.f32.mrf.mxu1 }
  0xe5   :  { %v571_v6 = vmax.f32 %v567_v3, 0.0  ;;  %v561_v7 = vadd.f32 %v560_v4, %v481_v2 }
  0xe7   :  { %v612_v8 = vand.u32 4294901760, %v571_v6  ;;  %v570_v9 = vmax.f32 %v561_v7, 0.0 }
  0xe9   :  { %v690_v11 = vsub.f32 %v571_v6, %v612_v8  ;;  %v615_v12 = vand.u32 4294901760, %v570_v9  ;;  %1631 = vmatpush3.msra.mxu0 %v612_v8 }
  0xea   :  { %1632 = vmatprep.subr.mxu0 %v1731_v36 }
  0xeb   :  { %v691_v13 = vand.u32 4294901760, %v690_v11  ;;  %v697_v14 = vsub.f32 %v570_v9, %v615_v12  ;;  %1633 = vmatpush3.msra.mxu0 %v615_v12 }
  0xec   :  { %1644 = vmatprep.subr.mxu0 %v1731_v36  ;;  %1635 = vmatmul.mubr.f32.vlgmr.msra.gmra.mxu0 %v654_v10 }
  0xed   :  { %v692_v15 = vsub.f32 %v690_v11, %v691_v13  ;;  %v698_v16 = vand.u32 4294901760, %v697_v14  ;;  %1645 = vmatpush3.msra.mxu0 %v690_v11  ;;  %1648 = vmatprep.mubr.msk.f32.mxu0 %vm1732_vm2, %v1731_v36 }
  0xee   :  { %1646 = vmatprep.subr.mxu0 %v1731_v36 }
  0xef   :  { %v699_v17 = vsub.f32 %v697_v14, %v698_v16  ;;  %1647 = vmatpush3.msra.mxu0 %v697_v14  ;;  %v693_v18 = vand.u32 4294901760, %v692_v15 }
  0xf0   :  { %1658 = vmatprep.subr.mxu0 %v1731_v36  ;;  %1649 = vmatmul.mubr.f32.vlgmr.msra.gmra.mxu0 %v651_v56  ;;  %v1048_v56 = vpop.permute.xlu1 %1047 }
  0xf1   :  { %1638 = vmatpush3.msra.mxu1 %v693_v18  ;;  %1659 = vmatpush3.msra.mxu0 %v691_v13  ;;  %v700_v19 = vand.u32 4294901760, %v699_v17 }
  0xf2   :  { %1639 = vmatprep.subr.mxu1 %v1731_v36  ;;  %1660 = vmatprep.subr.mxu0 %v1731_v36 }
  0xf3   :  { %1640 = vmatpush3.msra.mxu1 %v700_v19  ;;  %1661 = vmatpush3.msra.mxu0 %v698_v16 }
  0xf4   :  { %1642 = vmatmul.mubr.f32.vlgmr.msra.gmra.mxu1 %v1849_v51  ;;  %1651 = vmatprep.subr.mxu1 %v1731_v36 }
  0xf5   :  { %1652 = vmatpush3.msra.mxu1 %v612_v8  ;;  %1655 = vmatprep.mubr.msk.f32.mxu1 %vm1732_vm2, %v1731_v36 }
  0xf6   :  { %1653 = vmatprep.subr.mxu1 %v1731_v36  ;;  %1662 = vmatprep.mubr.msk.f32.mxu0 %vm1732_vm2, %v1731_v36 }
  0xf7   :  { %1654 = vmatpush3.msra.mxu1 %v615_v12  ;;  %1663 = vmatmul.mubr.f32.vlgmr.msra.gmra.mxu0 %v1849_v51 }
  0xf8   :  { %1656 = vmatmul.mubr.f32.vlgmr.msra.gmra.mxu1 %v652_v63  ;;  %1665 = vmatprep.subr.mxu1 %v1731_v36 }
  0xf9   :  { %1666 = vmatpush3.msra.mxu1 %v612_v8  ;;  %1669 = vmatprep.mubr.msk.f32.mxu1 %vm1732_vm2, %v1731_v36 }
  0xfa   :  { %1667 = vmatprep.subr.mxu1 %v1731_v36  ;;  %1672 = vmatprep.subr.mxu0 %v1731_v36 }
  0xfb   :  { %1668 = vmatpush3.msra.mxu1 %v615_v12  ;;  %1674 = vmatprep.mubr.msk.f32.mxu0 %vm1732_vm2, %v1731_v36 }
  0xfc   :  { %1670 = vmatmul.mubr.f32.vlgmr.msra.gmra.mxu1 %v1849_v51  ;;  %1677 = vmatprep.subr.mxu1 %v1731_v36 }
  0xfd   :  { %1679 = vmatprep.mubr.msk.f32.mxu1 %vm1732_vm2, %v1731_v36 }
 0x1ac   :  { %v656_v21 = vpop.f32.mrf.mxu0 }
 0x1ad   :  { %v657_v27 = vadd.f32 %v656_v21, %v577_v24 }
 0x1ae   :  { %v1636_v23 = vpop.f32.mrf.mxu0 }
 0x1b0   :  { %v813_v25 = vpop.f32.mrf.mxu0 }
 0x1b2   :  { %v1650_v28 = vpop.f32.mrf.mxu0 }
 0x1b4   :  { %v737_v29 = vpop.f32.mrf.mxu1 }
 0x1b5   :  { %v738_v31 = vadd.f32 %v737_v29, %v657_v27 }
 0x1b6   :  { %v1643_v32 = vpop.f32.mrf.mxu1 }
 0x1b7   :  { %v814_v33 = vadd.f32 %v813_v25, %v738_v31  ;;  %v965_v34 = vpop.f32.mrf.mxu0 }
 0x1b8   :  { %v888_v35 = vpop.f32.mrf.mxu1 }
 0x1b9   :  { %v889_v38 = vadd.f32 %v888_v35, %v814_v33  ;;  %v1664_v39 = vpop.f32.mrf.mxu0 }
 0x1ba   :  { %v1657_v40 = vpop.f32.mrf.mxu1 }
 0x1bb   :  { %v966_v41 = vadd.f32 %v965_v34, %v889_v38 }
 0x1bc   :  { %v1038_v42 = vpop.f32.mrf.mxu1 }
 0x1bd   :  { %v1039_v44 = vadd.f32 %v1038_v42, %v966_v41 }
 0x1be   :  { %v1671_v45 = vpop.f32.mrf.mxu1 }
 0x1bf   :  { %v1042_v46 = vmax.f32 %v1039_v44, 0.0 }
 0x1c1   :  { %v1085_v48 = vand.u32 4294901760, %v1042_v46 }
 0x1c3   :  { %v1162_v49 = vsub.f32 %v1042_v46, %v1085_v48  ;;  %1673 = vmatpush3.msra.mxu0 %v1085_v48 }
 0x1c4   :  { %1675 = vmatmul.mubr.f32.vlgmr.msra.gmra.mxu0 %v1124_v47  ;;  %1682 = vmatprep.subr.mxu0 %v1731_v36 }
 0x1c5   :  { %v1163_v50 = vand.u32 4294901760, %v1162_v49  ;;  %1683 = vmatpush3.msra.mxu0 %v1162_v49  ;;  %1684 = vmatprep.mubr.msk.f32.mxu0 %vm1732_vm2, %v1731_v36 }
 0x1c6   :  { %1692 = vmatprep.subr.mxu0 %v1731_v36 }
 0x1c7   :  { %v1164_v51 = vsub.f32 %v1162_v49, %v1163_v50 }
 0x1c8   :  { %1685 = vmatmul.mubr.f32.vlgmr.msra.gmra.mxu0 %v1121_v30 }
 0x1c9   :  { %1693 = vmatpush3.msra.mxu0 %v1163_v50  ;;  %v1165_v52 = vand.u32 4294901760, %v1164_v51  ;;  %1694 = vmatprep.mubr.msk.f32.mxu0 %vm1732_vm2, %v1731_v36 }
 0x1cb   :  { %1678 = vmatpush3.msra.mxu1 %v1165_v52 }
 0x1cc   :  { %1680 = vmatmul.mubr.f32.vlgmr.msra.gmra.mxu1 %v1120_v26  ;;  %1687 = vmatprep.subr.mxu1 %v1731_v36 }
 0x1cd   :  { %1688 = vmatpush3.msra.mxu1 %v1085_v48  ;;  %1689 = vmatprep.mubr.msk.f32.mxu1 %vm1732_vm2, %v1731_v36 }
 0x1ce   :  { %1697 = vmatprep.subr.mxu1 %v1731_v36  ;;  %1695 = vmatmul.mubr.f32.vlgmr.msra.gmra.mxu0 %v1120_v26 }
 0x1d0   :  { %1690 = vmatmul.mubr.f32.vlgmr.msra.gmra.mxu1 %v1122_v37 }
 0x1d1   :  { %1698 = vmatpush3.msra.mxu1 %v1085_v48  ;;  %1699 = vmatprep.mubr.msk.f32.mxu1 %vm1732_vm2, %v1731_v36 }
 0x1d4   :  { %1700 = vmatmul.mubr.f32.vlgmr.msra.gmra.mxu1 %v1120_v26 }
 0x284   :  { %v1126_v53 = vpop.f32.mrf.mxu0 }
 0x285   :  { %v1127_v58 = vadd.f32 %v1126_v53, %v1048_v56 }
 0x286   :  { %v1676_v54 = vpop.f32.mrf.mxu0 }
 0x288   :  { %v1276_v55 = vpop.f32.mrf.mxu0 }
 0x28a   :  { %v1686_v57 = vpop.f32.mrf.mxu0 }
 0x28c   :  { %v1202_v59 = vpop.f32.mrf.mxu1 }
 0x28d   :  { %v1203_v60 = vadd.f32 %v1202_v59, %v1127_v58 }
 0x28e   :  { %v1681_v61 = vpop.f32.mrf.mxu1  ;;  %v1424_v62 = vpop.f32.mrf.mxu0 }
 0x28f   :  { %v1277_v63 = vadd.f32 %v1276_v55, %v1203_v60 }
 0x290   :  { %v1350_v0 = vpop.f32.mrf.mxu1  ;;  %v1696_v1 = vpop.f32.mrf.mxu0 }
 0x291   :  { %v1351_v2 = vadd.f32 %v1350_v0, %v1277_v63 }
 0x292   :  { %v1691_v3 = vpop.f32.mrf.mxu1 }
 0x293   :  { %v1425_v4 = vadd.f32 %v1424_v62, %v1351_v2 }
 0x294   :  { %v1496_v36 = vpop.f32.mrf.mxu1 }
 0x295   :  { %v1497_v5 = vadd.f32 %v1496_v36, %v1425_v4 }
 0x296   :  { %v1701_v6 = vpop.f32.mrf.mxu1 }
 0x297   :  { %1501 = vst.msk [vmem:[#allocation2] sm:$0x7] %vm1500_vm5, %v1497_v5 }
 0x298   :  { %1719 = shalt.err (!%p1716_p4)
}
 0x299   :  { %1511 = dma.vmem_to_hbm [thread:$0]  %s1509_s6, 64, %s1904_s7, [#allocation3]  }
 0x29a   :  { %1728 = dma.done.wait [#allocation3], 64  }
 0x29b   :  { %1729 = vsyncadd [#allocation3], 4294967232 }
 0x29c   :  { %1515 = vsyncpa [#allocation3], 1 }

</bundles_post_ra>
